<compile_context>
chip_gen: v7x
topology: tpu7x:2x2x1
jax: 0.10.0
libtpu: 0.0.40
codegen_flags: <defaults>
</compile_context>

<pallas_src>
import functools
import math

import jax
import jax.numpy as jnp
from jax.experimental import pallas as pl
from jax.experimental.pallas import tpu as pltpu

LANES = 128
SUBLANES = 8
GRANULE = SUBLANES * LANES          # 1024: keeps `rows` a multiple of 8
NUM_CORES = 2                        # v7x has 2 TensorCores per chip
CHUNK_ROWS = 1024                    # rows streamed per inner-loop step
SENTINEL = -1e9                      # sigmoid(SENTINEL) == 0 (arg is clamped)


def _round_up(x, m):
    return (x + m - 1) // m * m


def _target_row_tile():
    """Row-tile target by TPU generation (f32 tile bytes = rows * 128 * 4)."""
    try:
        kind = jax.devices()[0].device_kind.lower()
    except Exception:  # pragma: no cover - defensive
        kind = ""
    if "v5" in kind or "v4" in kind:
        return 4096   # 2 MiB/input tile: friendly to v5e's smaller scoped VMEM
    return 8192       # 4 MiB/input tile: 16 MiB double-buffered on v6e/v7x


def _soft_dice_kernel(p, chunk_rows, blocks_per_core, needs_mask,
                      nrows_ref, logits_ref, labels_ref, partial_ref):
    """Accumulates per-core partial {numer, denor} sums into partial_ref.

    partial_ref block: (1, 2, 8, 128) f32 -- [0,0]=numer partials, [0,1]=denor.
    nrows_ref: SMEM (1,) int32 -- true number of valid rows (scalar prefetch).
    p / chunk_rows / blocks_per_core / needs_mask are trace-time constants.
    """
    c = pl.program_id(0)              # core (parallel axis)
    j = pl.program_id(1)              # row-tile index within this core
    row_tile = logits_ref.shape[0]
    valid_rows = nrows_ref[0]
    row_base = (c * blocks_per_core + j) * row_tile

    @pl.when(j == 0)
    def _init():
        partial_ref[...] = jnp.zeros_like(partial_ref)

    def accumulate_chunk(r0, nrows, apply_mask, num_acc, den_acc):
        x = logits_ref[pl.ds(r0, nrows), :].astype(jnp.float32)
        y = labels_ref[pl.ds(r0, nrows), :].astype(jnp.float32)
        if apply_mask:
            # Mask the RAW inputs (before sigmoid/pow): out-of-bounds block
            # rows hold garbage (possibly NaN) that must not reach the sums.
            row_idx = (row_base + r0 +
                       jax.lax.broadcasted_iota(jnp.int32, (nrows, LANES), 0))
            valid = row_idx < valid_rows
            x = jnp.where(valid, x, SENTINEL)
            y = jnp.where(valid, y, 0.0)
        # sigmoid via EUP exp + EUP reciprocal; clamp so exp never overflows
        # (sigmoid(x) == 0 at f32 precision for x <= -80).
        probs = pl.reciprocal(1.0 + jnp.exp(jnp.minimum(-x, 80.0)), approx=True)
        numer_vals = probs * y
        if p == 1:
            denor_vals = probs + y
        elif p == 2:
            denor_vals = probs * probs + y * y
        else:
            denor_vals = probs ** p + y ** p
        # Fold (nrows, 128) -> (8, 128) with pure VPU vreg adds (no XLU work).
        num_acc = num_acc + jnp.sum(
            numer_vals.reshape(nrows // SUBLANES, SUBLANES, LANES), axis=0)
        den_acc = den_acc + jnp.sum(
            denor_vals.reshape(nrows // SUBLANES, SUBLANES, LANES), axis=0)
        return num_acc, den_acc

    def accumulate_block(apply_mask):
        zero = jnp.zeros((SUBLANES, LANES), jnp.float32)
        n_full = row_tile // chunk_rows
        rem_rows = row_tile - n_full * chunk_rows

        def body(ci, carry):
            r0 = pl.multiple_of(ci * chunk_rows, chunk_rows)
            return accumulate_chunk(r0, chunk_rows, apply_mask, *carry)

        num_acc, den_acc = jax.lax.fori_loop(0, n_full, body, (zero, zero),
                                             unroll=True)
        if rem_rows:
            num_acc, den_acc = accumulate_chunk(n_full * chunk_rows, rem_rows,
                                                apply_mask, num_acc, den_acc)
        partial_ref[0, 0] += num_acc
        partial_ref[0, 1] += den_acc

    if needs_mask:
        block_full = row_base + row_tile <= valid_rows

        @pl.when(block_full)
        def _full():
            accumulate_block(False)

        @pl.when(jnp.logical_not(block_full))
        def _ragged():
            accumulate_block(True)
    else:
        accumulate_block(False)


def soft_dice_loss_v1(logits, labels, p=1, smooth=1.0, *, row_tile=None):
    """Pallas implementation of SoftDiceLossV1.forward; returns an f32 scalar.

    `row_tile` is a test-only override of the generation-dependent tile.
    """
    assert logits.shape == labels.shape
    assert p > 0, "sentinel/zero padding requires p > 0"
    total = math.prod(logits.shape)

    flat_logits = logits.reshape(-1)
    flat_labels = labels.reshape(-1)

    # Pad only to the next (8*128) granule (< 1024 elements) so the lane-dense
    # reshape below is layout-free.  Sentinel logits / zero labels contribute
    # nothing to either sum.  Granule-aligned inputs take the no-copy path.
    padded_total = _round_up(total, GRANULE)
    if padded_total != total:
        pad = padded_total - total
        flat_logits = jnp.pad(flat_logits, (0, pad), constant_values=SENTINEL)
        flat_labels = jnp.pad(flat_labels, (0, pad), constant_values=0)
    rows = padded_total // LANES

    logits2d = flat_logits.reshape(rows, LANES)
    labels2d = flat_labels.reshape(rows, LANES)

    if row_tile is None:
        row_tile = _target_row_tile()
    assert row_tile % SUBLANES == 0
    row_tile = min(row_tile, rows)          # full-dim block for small inputs
    total_blocks = pl.cdiv(rows, row_tile)
    num_cores = min(NUM_CORES, total_blocks)
    blocks_per_core = pl.cdiv(total_blocks, num_cores)
    # Mask only when the logical grid (cores x blocks x row_tile) over-covers
    # the true row count (ragged last block and/or odd block count).
    needs_mask = (num_cores * blocks_per_core * row_tile) != rows
    chunk_rows = min(CHUNK_ROWS, row_tile)

    def in_index_map(c, j, nrows_ref):
        # Clamp so an odd block count never maps a fully out-of-range block;
        # the re-read block is fully masked inside the kernel.
        blk = jnp.minimum(c * blocks_per_core + j, total_blocks - 1)
        return (blk, 0)

    tile_spec = pl.BlockSpec((row_tile, LANES), in_index_map)

    kernel = functools.partial(_soft_dice_kernel, p, chunk_rows,
                               blocks_per_core, needs_mask)

    partials = pl.pallas_call(
        kernel,
        out_shape=jax.ShapeDtypeStruct((num_cores, 2, SUBLANES, LANES),
                                       jnp.float32),
        grid_spec=pltpu.PrefetchScalarGridSpec(
            num_scalar_prefetch=1,
            grid=(num_cores, blocks_per_core),
            in_specs=[tile_spec, tile_spec],
            out_specs=pl.BlockSpec((1, 2, SUBLANES, LANES),
                                   lambda c, j, nrows_ref: (c, 0, 0, 0)),
        ),
        compiler_params=pltpu.CompilerParams(
            dimension_semantics=("parallel", "arbitrary"),
            vmem_limit_bytes=32 * 1024 * 1024,
        ),
    )(jnp.array([rows], dtype=jnp.int32), logits2d, labels2d)

    # Final combine (cross-core + cross-lane) is tiny; do it in plain JAX.
    numer = jnp.sum(partials[:, 0])
    denor = jnp.sum(partials[:, 1])
    smooth = jnp.float32(smooth)
    return 1.0 - (2.0 * numer + smooth) / (denor + smooth)


def _reference(logits, labels, p=1, smooth=1.0):
    probs = jax.nn.sigmoid(logits.astype(jnp.float32))
    labels = labels.astype(jnp.float32)
    numer = jnp.sum(probs * labels)
    denor = jnp.sum(probs ** p + labels ** p)
    return 1.0 - (2.0 * numer + smooth) / (denor + smooth)


if __name__ == "__main__":
    key = jax.random.PRNGKey(0)
    k1, k2 = jax.random.split(key)

    # Tolerance: approx EUP reciprocal + different accumulation order.
    ATOL = RTOL = 2e-3

    # 1) (N, C, H, W) input consistent with the module docstring.
    shape = (2, 4, 16, 16)
    logits = jax.random.normal(k1, shape, dtype=jnp.float32)
    labels = (jax.random.uniform(k2, shape) > 0.5).astype(jnp.float32)
    loss = jax.block_until_ready(soft_dice_loss_v1(logits, labels, p=1, smooth=1.0))
    ref = _reference(logits, labels, p=1, smooth=1.0)
    assert jnp.allclose(loss, ref, atol=ATOL, rtol=RTOL), (loss, ref)

    # 2) Non-granule-aligned total (exercises the small sentinel pad) and p=2.
    shape2 = (3, 5, 7, 11)
    logits2 = jax.random.normal(k1, shape2, dtype=jnp.float32)
    labels2 = (jax.random.uniform(k2, shape2) > 0.5).astype(jnp.float32)
    loss2 = jax.block_until_ready(soft_dice_loss_v1(logits2, labels2, p=2, smooth=1.0))
    ref2 = _reference(logits2, labels2, p=2, smooth=1.0)
    assert jnp.allclose(loss2, ref2, atol=ATOL, rtol=RTOL), (loss2, ref2)

    # 3) Multi-block + 2-core split with exact coverage (small row_tile override).
    shape3 = (2, 4, 64, 64)
    logits3 = jax.random.normal(k1, shape3, dtype=jnp.float32)
    labels3 = (jax.random.uniform(k2, shape3) > 0.5).astype(jnp.float32)
    loss3 = jax.block_until_ready(
        soft_dice_loss_v1(logits3, labels3, p=1, smooth=1.0, row_tile=64))
    ref3 = _reference(logits3, labels3, p=1, smooth=1.0)
    assert jnp.allclose(loss3, ref3, atol=ATOL, rtol=RTOL), (loss3, ref3)

    # 4) Ragged multi-block: exercises in-kernel masking + block-index clamp.
    shape4 = (2, 4, 40, 40)
    logits4 = jax.random.normal(k1, shape4, dtype=jnp.float32)
    labels4 = (jax.random.uniform(k2, shape4) > 0.5).astype(jnp.float32)
    loss4 = jax.block_until_ready(
        soft_dice_loss_v1(logits4, labels4, p=1, smooth=1.0, row_tile=16))
    ref4 = _reference(logits4, labels4, p=1, smooth=1.0)
    assert jnp.allclose(loss4, ref4, atol=ATOL, rtol=RTOL), (loss4, ref4)

    print("KERNEL_OK")
</pallas_src>

<mosaic_0001>
module attributes {stable_mosaic.version = 11 : i64} {
  func.func @_soft_dice_kernel(%arg0: i32, %arg1: i32, %arg2: memref<1xi32, #tpu.memory_space<smem>>, %arg3: memref<16x128xf32, #tpu.memory_space<vmem>>, %arg4: memref<16x128xf32, #tpu.memory_space<vmem>>, %arg5: memref<1x2x8x128xf32, #tpu.memory_space<vmem>>) attributes {dimension_semantics = [#tpu.dimension_semantics<parallel>, #tpu.dimension_semantics<arbitrary>], iteration_bounds = array<i64: 1, 1>, scalar_prefetch = 1 : i64, scratch_operands = 0 : i64, tpu.core_type = #tpu.core_type<tc>, window_params = [{transform_indices = @transform_0, window_bounds = array<i64: 16, 128>}, {transform_indices = @transform_1, window_bounds = array<i64: 16, 128>}, {transform_indices = @transform_2, window_bounds = array<i64: 1, 2, 8, 128>}]} {
    %c0_i32 = arith.constant 0 : i32
    %0 = arith.cmpi eq, %arg1, %c0_i32 : i32
    %1 = arith.extui %0 : i1 to i32
    %c0_i32_0 = arith.constant 0 : i32
    %2 = arith.cmpi ne, %1, %c0_i32_0 : i32
    scf.if %2 {
      %cst_23 = arith.constant 0.000000e+00 : f32
      %38 = vector.broadcast %cst_23 : f32 to vector<1x2x8x128xf32>
      %c0_24 = arith.constant 0 : index
      %c0_25 = arith.constant 0 : index
      %c0_26 = arith.constant 0 : index
      %c0_27 = arith.constant 0 : index
      %39 = vector.load %arg5[%c0_24, %c0_25, %c0_26, %c0_27] : memref<1x2x8x128xf32, #tpu.memory_space<vmem>>, vector<1x2x8x128xf32>
      tpu.vector_store %arg5[%c0_24, %c0_25, %c0_26, %c0_27], %38 {strides = array<i32>} : memref<1x2x8x128xf32, #tpu.memory_space<vmem>>, vector<1x2x8x128xf32>,
    } else {
    }
    %cst = arith.constant 0.000000e+00 : f32
    %3 = vector.broadcast %cst : f32 to vector<8x128xf32>
    %c0_i32_1 = arith.constant 0 : i32
    %c16_i32 = arith.constant 16 : i32
    %4 = arith.muli %c0_i32_1, %c16_i32 : i32
    %5 = tpu.assume_multiple %4, 16 : i32
    %6 = arith.index_cast %5 : i32 to index
    %c0 = arith.constant 0 : index
    %7 = vector.load %arg3[%6, %c0] : memref<16x128xf32, #tpu.memory_space<vmem>>, vector<16x128xf32>
    %8 = arith.index_cast %5 : i32 to index
    %c0_2 = arith.constant 0 : index
    %9 = vector.load %arg4[%8, %c0_2] : memref<16x128xf32, #tpu.memory_space<vmem>>, vector<16x128xf32>
    %cst_3 = arith.constant 0.000000e+00 : f32
    %10 = vector.broadcast %cst_3 : f32 to vector<16x128xf32>
    %11 = arith.subf %10, %7 : vector<16x128xf32>
    %cst_4 = arith.constant 8.000000e+01 : f32
    %12 = vector.broadcast %cst_4 : f32 to vector<16x128xf32>
    %13 = arith.minimumf %11, %12 : vector<16x128xf32>
    %14 = math.exp %13 : vector<16x128xf32>
    %cst_5 = arith.constant 1.000000e+00 : f32
    %15 = vector.broadcast %cst_5 : f32 to vector<16x128xf32>
    %16 = arith.addf %15, %14 : vector<16x128xf32>
    %17 = tpu.reciprocal %16 {approx = true} : vector<16x128xf32> -> vector<16x128xf32>
    %18 = arith.mulf %17, %9 : vector<16x128xf32>
    %19 = arith.addf %17, %9 : vector<16x128xf32>
    %20 = vector.shape_cast %18 : vector<16x128xf32> to vector<2x8x128xf32>
    %cst_6 = arith.constant dense<0.000000e+00> : vector<8x128xf32>
    %21 = vector.multi_reduction <add>, %20, %cst_6 [0] : vector<2x8x128xf32> to vector<8x128xf32>
    %22 = arith.addf %3, %21 : vector<8x128xf32>
    %23 = vector.shape_cast %19 : vector<16x128xf32> to vector<2x8x128xf32>
    %cst_7 = arith.constant dense<0.000000e+00> : vector<8x128xf32>
    %24 = vector.multi_reduction <add>, %23, %cst_7 [0] : vector<2x8x128xf32> to vector<8x128xf32>
    %25 = arith.addf %3, %24 : vector<8x128xf32>
    %c1_i32 = arith.constant 1 : i32
    %c0_8 = arith.constant 0 : index
    %c0_9 = arith.constant 0 : index
    %c0_10 = arith.constant 0 : index
    %c0_11 = arith.constant 0 : index
    %26 = vector.load %arg5[%c0_8, %c0_9, %c0_10, %c0_11] : memref<1x2x8x128xf32, #tpu.memory_space<vmem>>, vector<1x1x8x128xf32>
    %27 = vector.shape_cast %26 : vector<1x1x8x128xf32> to vector<8x128xf32>
    %28 = arith.addf %27, %22 : vector<8x128xf32>
    %c0_12 = arith.constant 0 : index
    %c0_13 = arith.constant 0 : index
    %c0_14 = arith.constant 0 : index
    %c0_15 = arith.constant 0 : index
    %29 = vector.load %arg5[%c0_12, %c0_13, %c0_14, %c0_15] : memref<1x2x8x128xf32, #tpu.memory_space<vmem>>, vector<1x1x8x128xf32>
    %30 = vector.shape_cast %29 : vector<1x1x8x128xf32> to vector<8x128xf32>
    %31 = vector.shape_cast %28 : vector<8x128xf32> to vector<1x1x8x128xf32>
    tpu.vector_store %arg5[%c0_12, %c0_13, %c0_14, %c0_15], %31 {strides = array<i32>} : memref<1x2x8x128xf32, #tpu.memory_space<vmem>>, vector<1x1x8x128xf32>,
    %c0_16 = arith.constant 0 : index
    %c1 = arith.constant 1 : index
    %c0_17 = arith.constant 0 : index
    %c0_18 = arith.constant 0 : index
    %32 = vector.load %arg5[%c0_16, %c1, %c0_17, %c0_18] : memref<1x2x8x128xf32, #tpu.memory_space<vmem>>, vector<1x1x8x128xf32>
    %33 = vector.shape_cast %32 : vector<1x1x8x128xf32> to vector<8x128xf32>
    %34 = arith.addf %33, %25 : vector<8x128xf32>
    %c0_19 = arith.constant 0 : index
    %c1_20 = arith.constant 1 : index
    %c0_21 = arith.constant 0 : index
    %c0_22 = arith.constant 0 : index
    %35 = vector.load %arg5[%c0_19, %c1_20, %c0_21, %c0_22] : memref<1x2x8x128xf32, #tpu.memory_space<vmem>>, vector<1x1x8x128xf32>
    %36 = vector.shape_cast %35 : vector<1x1x8x128xf32> to vector<8x128xf32>
    %37 = vector.shape_cast %34 : vector<8x128xf32> to vector<1x1x8x128xf32>
    tpu.vector_store %arg5[%c0_19, %c1_20, %c0_21, %c0_22], %37 {strides = array<i32>} : memref<1x2x8x128xf32, #tpu.memory_space<vmem>>, vector<1x1x8x128xf32>,
    return
  }
  func.func @transform_0(%arg0: i32, %arg1: i32, %arg2: memref<1xi32, #tpu.memory_space<smem>>) -> (i32, i32) {
    %c1_i32 = arith.constant 1 : i32
    %0 = arith.muli %arg0, %c1_i32 : i32
    %1 = arith.addi %0, %arg1 : i32
    %c0_i32 = arith.constant 0 : i32
    %2 = arith.minsi %1, %c0_i32 : i32
    %c0_i32_0 = arith.constant 0 : i32
    %c0_i32_1 = arith.constant 0 : i32
    return %2, %c0_i32_0 : i32, i32
  }
  func.func @transform_1(%arg0: i32, %arg1: i32, %arg2: memref<1xi32, #tpu.memory_space<smem>>) -> (i32, i32) {
    %c1_i32 = arith.constant 1 : i32
    %0 = arith.muli %arg0, %c1_i32 : i32
    %1 = arith.addi %0, %arg1 : i32
    %c0_i32 = arith.constant 0 : i32
    %2 = arith.minsi %1, %c0_i32 : i32
    %c0_i32_0 = arith.constant 0 : i32
    %c0_i32_1 = arith.constant 0 : i32
    return %2, %c0_i32_0 : i32, i32
  }
  func.func @transform_2(%arg0: i32, %arg1: i32, %arg2: memref<1xi32, #tpu.memory_space<smem>>) -> (i32, i32, i32, i32) {
    %c0_i32 = arith.constant 0 : i32
    %c0_i32_0 = arith.constant 0 : i32
    %c0_i32_1 = arith.constant 0 : i32
    %c0_i32_2 = arith.constant 0 : i32
    return %arg0, %c0_i32, %c0_i32_0, %c0_i32_1 : i32, i32, i32, i32
  }
}

</mosaic_0001>

<bundles_post_ra>
// kernel: tpu_custom_call.1
= control target key start
LH: loop header
LB: loop body
LE: loop exit
PB: predicated region body
PF: predicated region fallthrough
CT: control target
= control target key end

     0   :  { %9 = vsyncpa [#allocation5], 0  ;;  %s277_s0 = inlined_call_operand.<no memory space> [shape: s32[1], index: 0, kind: input, shape index: {}]   ;;  %s278_s1 = inlined_call_operand.hbm [shape: f32[16,128], index: 1, kind: input, shape index: {}]   ;;  %s279_s2 = inlined_call_operand.hbm [shape: f32[16,128], index: 2, kind: input, shape index: {}]   ;;  %s280_s3 = inlined_call_operand.hbm [shape: f32[1,2,8,128], index: 3, kind: output, shape index: {}]  }
   0x1   :  { %10 = vsyncpa [#allocation8], 0 }
   0x2   :  { %11 = vsyncpa [#allocation6], 0  ;;  %s207_s12 = smov [#allocation4]   ;;  %s135_s16 = scalar_lea.hbm %s278_s1, 256 }
   0x3   :  { %s23_s13 = sshll.u32 %s207_s12, 4  ;;  %p136_p0 = scmp.ne.s32.totalorder %s278_s1, %s135_s16  ;;  %s24_s13 = int_to_ptr.vmem [resolvable:$true] %s23_s13 }
   0x4   :  { %p139_p1 = scmp.lt.u32.totalorder %s135_s16, %s278_s1 }
   0x6   :  { %p141_p2 = pnand %p139_p1, %p136_p0 }
   0x8   :  { %144 = shalt.err (!%p141_p2)
}
   0x9   :  { %s145_s20 = scalar_lea.vmem %s24_s13, 256  ;;  %p150_p4 = scmp.lt.s32.totalorder %s24_s13, %s24_s13 }
   0xa   :  { %p146_p3 = scmp.ne.s32.totalorder %s24_s13, %s145_s20  ;;  %p151_p5 = scmp.lt.s32.totalorder %s145_s20, %s145_s20 }
   0xc   :  { %p152_p6 = por %p151_p5, %p150_p4 }
   0xe   :  { %p153_p7 = pnand %p152_p6, %p146_p3 }
  0x10   :  { %156 = shalt.err (!%p153_p7)
}
  0x11   :  { %s208_s21 = smov 128   ;;  %s209_s22 = smov 8  }
  0x12   :  { %29 = dma.hbm_to_vmem [thread:$0]  %s278_s1, 256, %s24_s13, [#allocation5], %s208_s21, %s208_s21, %s209_s22  }
  0x13   :  { %s210_s25 = smov [#allocation7]   ;;  %s157_s29 = scalar_lea.hbm %s279_s2, 256 }
  0x14   :  { %s41_s26 = sshll.u32 %s210_s25, 4  ;;  %p158_p8 = scmp.ne.s32.totalorder %s279_s2, %s157_s29  ;;  %s42_s26 = int_to_ptr.vmem [resolvable:$true] %s41_s26 }
  0x15   :  { %p161_p9 = scmp.lt.u32.totalorder %s157_s29, %s279_s2 }
  0x17   :  { %p163_p10 = pnand %p161_p9, %p158_p8 }
  0x19   :  { %166 = shalt.err (!%p163_p10)
}
  0x1a   :  { %s167_s7 = scalar_lea.vmem %s42_s26, 256  ;;  %p172_p12 = scmp.lt.s32.totalorder %s42_s26, %s42_s26 }
  0x1b   :  { %p168_p11 = scmp.ne.s32.totalorder %s42_s26, %s167_s7  ;;  %p173_p13 = scmp.lt.s32.totalorder %s167_s7, %s167_s7 }
  0x1d   :  { %p174_p0 = por %p173_p13, %p172_p12 }
  0x1f   :  { %p175_p1 = pnand %p174_p0, %p168_p11 }
  0x21   :  { %178 = shalt.err (!%p175_p1)
}
  0x22   :  { %47 = dma.hbm_to_vmem [thread:$0]  %s279_s2, 256, %s42_s26, [#allocation8], %s208_s21, %s208_s21, %s209_s22  }
  0x23   :  { %201 = dma.done.wait [#allocation5], 256  }
  0x24   :  { %202 = vsyncadd [#allocation5], 4294967040 }
  0x25   :  { %203 = dma.done.wait [#allocation8], 256  }
  0x26   :  { %204 = vsyncadd [#allocation8], 4294967040  ;;  %v68_v0 = vld [vmem:[#allocation4] sm:$0xff]  ;;  %v69_v1 = vld [vmem:[#allocation4 + $0x8] sm:$0xff]  ;;  %s211_s2 = smov [#allocation9]  }
  0x27   :  { %v72_v2 = vsub.f32 0.0, %v68_v0  ;;  %v73_v3 = vsub.f32 0.0, %v69_v1  ;;  %v70_v12 = vld [vmem:[#allocation7] sm:$0xff]  ;;  %v71_v13 = vld [vmem:[#allocation7 + $0x8] sm:$0xff]  ;;  %s104_s9 = sshll.u32 %s211_s2, 4  ;;  %s105_s9 = int_to_ptr.vmem [resolvable:$true] %s104_s9 }
  0x28   :  { %s179_s10 = scalar_lea.vmem %s105_s9, 256  ;;  %p184_p3 = scmp.lt.s32.totalorder %s105_s9, %s105_s9 }
  0x29   :  { %v74_v4 = vmin.f32 %v72_v2, 80.0  ;;  %v75_v5 = vmin.f32 %v73_v3, 80.0  ;;  %p180_p2 = scmp.ne.s32.totalorder %s105_s9, %s179_s10  ;;  %p185_p4 = scmp.lt.s32.totalorder %s179_s10, %s179_s10 }
  0x2b   :  { %v76_v6 = vmul.f32 1.442695, %v74_v4  ;;  %v78_v7 = vmul.f32 1.442695, %v75_v5  ;;  %p186_p5 = por %p185_p4, %p184_p3 }
  0x2d   :  { %127 = vpow2.f32 %v76_v6  ;;  %p187_p6 = pnand %p186_p5, %p180_p2 }
  0x2e   :  { %129 = vpow2.f32 %v78_v7 }
  0x37   :  { %v128_v8 = vpop.eup %127 }
  0x38   :  { %v130_v9 = vpop.eup %129  ;;  %v80_v10 = vadd.f32 1.0, %v128_v8 }
  0x39   :  { %v81_v11 = vadd.f32 1.0, %v130_v9 }
  0x3a   :  { %131 = vrcp.f32 %v80_v10 }
  0x3b   :  { %133 = vrcp.f32 %v81_v11 }
  0x44   :  { %v132_v14 = vpop.eup %131 }
  0x45   :  { %v134_v15 = vpop.eup %133  ;;  %v84_v16 = vmul.f32 %v132_v14, %v70_v12  ;;  %v86_v17 = vadd.f32 %v132_v14, %v70_v12 }
  0x46   :  { %v85_v18 = vmul.f32 %v134_v15, %v71_v13  ;;  %v87_v19 = vadd.f32 %v134_v15, %v71_v13 }
  0x48   :  { %v88_v20 = vadd.f32 %v85_v18, %v84_v16  ;;  %v90_v21 = vadd.f32 %v87_v19, %v86_v17 }
  0x4a   :  { %94 = vst [vmem:[#allocation9] sm:$0xff] %v88_v20  ;;  %98 = vst [vmem:[#allocation9 + $0x8] sm:$0xff] %v90_v21 }
  0x4b   :  { %190 = shalt.err (!%p187_p6)
}
  0x4c   :  { %s191_s13 = scalar_lea.hbm %s280_s3, 256 }
  0x4d   :  { %p192_p7 = scmp.ne.s32.totalorder %s280_s3, %s191_s13  ;;  %p195_p8 = scmp.lt.u32.totalorder %s191_s13, %s280_s3 }
  0x4f   :  { %p197_p9 = pnand %p195_p8, %p192_p7 }
  0x51   :  { %200 = shalt.err (!%p197_p9)
}
  0x52   :  { %110 = dma.vmem_to_hbm [thread:$0]  %s105_s9, 256, %s280_s3, [#allocation6], %s208_s21, %s208_s21, %s209_s22  }
  0x53   :  { %205 = dma.done.wait [#allocation6], 256  }
  0x54   :  { %206 = vsyncadd [#allocation6], 4294967040 }
  0x55   :  { %114 = vsyncpa [#allocation5], 1 }
  0x56   :  { %115 = vsyncpa [#allocation8], 1 }
  0x57   :  { %116 = vsyncpa [#allocation6], 1 }

</bundles_post_ra>
